<compile_context>
chip_gen: v7x
topology: tpu7x:2x2x1
jax: 0.10.0
libtpu: 0.0.40
codegen_flags: <defaults>
</compile_context>

<pallas_src>
import functools

import numpy as np
import jax
import jax.numpy as jnp
from jax import lax
from jax.experimental import pallas as pl
from jax.experimental.pallas import tpu as pltpu

_LANE = 128  # TPU lane width; halo is a multiple of this so the interior store is aligned


def _round_up(v, m):
    return (v + m - 1) // m * m


def _dwconv3x3_rows_kernel(x_ref, w_ref, m_ref, o_ref, pad_ref, *, H, W, halo):
    """One grid step = one block of Rb fused (batch*channel) image rows.

    x_ref  : (Rb, L)            input rows, each one image flattened, L = H*W
    w_ref  : (Rb, 9)            per-row 3x3 taps, row-major (ki*3 + kj)
    m_ref  : (2, L)             column-validity masks (row 0: dj=-1, row 1: dj=+1)
    o_ref  : (Rb, L)            output rows (same flat layout)
    pad_ref: (Rb, L + 2*halo)   f32 VMEM scratch: image rows with a zero halo
    """
    Rb = x_ref.shape[0]
    L = H * W
    hw = W + 1  # widest off-centre tap reach into the halo

    # Zero ONLY the halo columns the taps actually read (interior is fully
    # overwritten right below) -- no full-scratch clear per step.
    zeros_halo = jnp.zeros((Rb, hw), jnp.float32)
    pad_ref[:, halo - hw:halo] = zeros_halo
    pad_ref[:, halo + L:halo + L + hw] = zeros_halo
    # Stage the block once in f32 (lane-aligned store: halo % 128 == 0).
    pad_ref[:, halo:halo + L] = x_ref[...].astype(jnp.float32)

    mask_m = m_ref[0:1, :]  # (1, L): 1.0 where the j-1 neighbour exists (col >= 1)
    mask_p = m_ref[1:2, :]  # (1, L): 1.0 where the j+1 neighbour exists (col <= W-2)

    def tap(di, dj):
        s = di * W + dj                                   # flat-index shift of this tap
        return pad_ref[:, halo + s:halo + s + L]          # (Rb, L)

    def wcol(di, dj):
        t = (di + 1) * 3 + (dj + 1)                       # matches PyTorch (ki, kj) order
        return w_ref[:, t:t + 1].astype(jnp.float32)      # (Rb, 1) per-row tap weight

    def dj_group(dj):
        # Accumulator starts from the di=0 term -> no zeros materialization.
        g = tap(0, dj) * wcol(0, dj)
        g = g + tap(-1, dj) * wcol(-1, dj)
        g = g + tap(1, dj) * wcol(1, dj)
        return g

    # Column masks are row(di)-invariant, so apply them once per dj group:
    # 2 mask multiplies total instead of 6.  Vertical out-of-image taps read
    # the zero halo, so no row masks are needed at all.
    acc = dj_group(0)
    acc = acc + mask_m * dj_group(-1)
    acc = acc + mask_p * dj_group(1)
    o_ref[...] = acc.astype(o_ref.dtype)


def trainable_smoothing_forward(x, kernel, io_dtype=None):
    """Depthwise 3x3 conv, padding=1, groups=C, bias=False (NCHW layout).

    x: (N, C, H, W); kernel: (C, 1, 3, 3) trainable depthwise weights.
    io_dtype: optional narrower activation dtype (e.g. jnp.bfloat16) for the
      pallas_call boundary blocks (halves HBM traffic); accumulation is f32.
      Default None keeps full f32 I/O parity with the PyTorch module.
    """
    N, C, H, W = x.shape
    L = H * W
    n_rows = N * C

    # Lane-aligned halo that covers the widest tap reach (W + 1): valid for
    # any image width (fixes the old fixed-128 halo's W >= 128 hazard).
    halo = _round_up(W + 1, _LANE)
    assert halo >= W + 1 and halo % _LANE == 0

    act_dtype = jnp.dtype(io_dtype) if io_dtype is not None else jnp.dtype(x.dtype)
    io_bytes = act_dtype.itemsize

    # ---- generation-aware block sizing -------------------------------------
    try:
        vmem_cap = int(pltpu.get_tpu_info().vmem_capacity_bytes)
    except Exception:
        vmem_cap = 64 * 1024 * 1024  # v7x per-core VMEM; conservative fallback
    block_budget = vmem_cap // 4     # headroom for pipelining + constants
    # Per-row bytes: double-buffered input + output blocks + f32 halo scratch.
    per_row = 2 * io_bytes * L + 2 * io_bytes * L + 4 * (L + 2 * halo)
    rb = block_budget // max(per_row, 1)
    rb = max(8, (rb // 8) * 8)                     # sublane-aligned (8 f32 rows/vreg)
    rb = min(rb, _round_up(n_rows, 8))
    if n_rows >= 16:
        # Keep at least 2 grid steps so both megacore TCs get work.
        rb = min(rb, _round_up(n_rows, 16) // 2)
    n_rows_pad = _round_up(n_rows, rb)

    # ---- operands in the fused-row, lane-dense layout ----------------------
    x_rows = x.reshape(n_rows, L).astype(act_dtype)          # contiguous reshape: free
    w_rows = jnp.tile(kernel.reshape(C, 9).astype(jnp.float32), (N, 1))  # (N*C, 9)
    if n_rows_pad != n_rows:
        x_rows = jnp.pad(x_rows, ((0, n_rows_pad - n_rows), (0, 0)))
        w_rows = jnp.pad(w_rows, ((0, n_rows_pad - n_rows), (0, 0)))

    # Column-validity masks for the dj = -1 / +1 tap groups (static constants;
    # baked into the graph when called under jax.jit).
    col = np.arange(L) % W
    masks = jnp.asarray(np.stack([(col >= 1), (col <= W - 2)]).astype(np.float32))

    kern = functools.partial(_dwconv3x3_rows_kernel, H=H, W=W, halo=halo)

    vmem_limit = int(min(vmem_cap // 2,
                         max(32 * 1024 * 1024, 2 * rb * per_row + (1 << 20))))

    out_rows = pl.pallas_call(
        kern,
        out_shape=jax.ShapeDtypeStruct((n_rows_pad, L), act_dtype),
        grid=(n_rows_pad // rb,),
        in_specs=[
            pl.BlockSpec((rb, L), lambda r: (r, 0)),   # activation row block
            pl.BlockSpec((rb, 9), lambda r: (r, 0)),   # per-row 3x3 taps
            pl.BlockSpec((2, L), lambda r: (0, 0)),    # column masks (constant block)
        ],
        out_specs=pl.BlockSpec((rb, L), lambda r: (r, 0)),
        scratch_shapes=[pltpu.VMEM((rb, L + 2 * halo), jnp.float32)],
        compiler_params=pltpu.CompilerParams(
            dimension_semantics=("parallel",),
            vmem_limit_bytes=vmem_limit,
        ),
    )(x_rows, w_rows, masks)

    return out_rows[:n_rows].reshape(N, C, H, W)


def init_params(in_channels):
    # Matches PyTorch __init__: 1/9 box filter repeated per channel,
    # shape (in_channels, 1, 3, 3). Deterministic.
    initial = jnp.full((3, 3), 1.0 / 9.0, dtype=jnp.float32)
    return jnp.broadcast_to(initial[None, None, :, :],
                            (in_channels, 1, 3, 3)).astype(jnp.float32)


def _reference(x, kernel, C):
    return lax.conv_general_dilated(
        x, kernel,
        window_strides=(1, 1),
        padding=((1, 1), (1, 1)),
        dimension_numbers=("NCHW", "OIHW", "NCHW"),
        feature_group_count=C)


if __name__ == "__main__":
    N, C, H, W = 2, 4, 16, 16
    key = jax.random.PRNGKey(0)
    k1, k2 = jax.random.split(key)
    x = jax.random.normal(k1, (N, C, H, W), dtype=jnp.float32)

    fwd = jax.jit(trainable_smoothing_forward)

    # 1) Module-faithful run with the 1/9 box-filter initialization.
    kernel = init_params(C)
    out = jax.block_until_ready(fwd(x, kernel))
    assert out.shape == (N, C, H, W)
    np.testing.assert_allclose(np.asarray(out), np.asarray(_reference(x, kernel, C)),
                               rtol=1e-5, atol=1e-5)

    # 2) Extra check with perturbed (trained-like) per-channel weights to
    #    exercise the trainable-weight / per-channel path.
    kernel2 = kernel + 0.01 * jax.random.normal(k2, kernel.shape, dtype=jnp.float32)
    out2 = jax.block_until_ready(fwd(x, kernel2))
    np.testing.assert_allclose(np.asarray(out2), np.asarray(_reference(x, kernel2, C)),
                               rtol=1e-5, atol=1e-5)

    print("KERNEL_OK")
</pallas_src>

<mosaic_0001>
module attributes {stable_mosaic.version = 11 : i64} {
  func.func @_dwconv3x3_rows_kernel(%arg0: i32, %arg1: memref<8x256xf32, #tpu.memory_space<vmem>>, %arg2: memref<8x9xf32, #tpu.memory_space<vmem>>, %arg3: memref<2x256xf32, #tpu.memory_space<vmem>>, %arg4: memref<8x256xf32, #tpu.memory_space<vmem>>, %arg5: memref<8x512xf32, #tpu.memory_space<vmem>>) attributes {dimension_semantics = [#tpu.dimension_semantics<parallel>], iteration_bounds = array<i64: 1>, scalar_prefetch = 0 : i64, scratch_operands = 1 : i64, tpu.core_type = #tpu.core_type<tc>, window_params = [{transform_indices = @transform_0, window_bounds = array<i64: 8, 256>}, {transform_indices = @transform_1, window_bounds = array<i64: 8, 9>}, {pipeline_mode = #tpu.pipeline_mode<synchronous>, transform_indices = @transform_2, window_bounds = array<i64: 2, 256>}, {transform_indices = @transform_3, window_bounds = array<i64: 8, 256>}]} {
    %cst = arith.constant 0.000000e+00 : f32
    %0 = vector.broadcast %cst : f32 to vector<8x17xf32>
    %c0 = arith.constant 0 : index
    %c111 = arith.constant 111 : index
    %1 = vector.load %arg5[%c0, %c111] : memref<8x512xf32, #tpu.memory_space<vmem>>, vector<8x17xf32>
    tpu.vector_store %arg5[%c0, %c111], %0 {strides = array<i32>} : memref<8x512xf32, #tpu.memory_space<vmem>>, vector<8x17xf32>,
    %c0_0 = arith.constant 0 : index
    %c384 = arith.constant 384 : index
    %2 = vector.load %arg5[%c0_0, %c384] : memref<8x512xf32, #tpu.memory_space<vmem>>, vector<8x17xf32>
    tpu.vector_store %arg5[%c0_0, %c384], %0 {strides = array<i32>} : memref<8x512xf32, #tpu.memory_space<vmem>>, vector<8x17xf32>,
    %c0_1 = arith.constant 0 : index
    %c0_2 = arith.constant 0 : index
    %3 = vector.load %arg1[%c0_1, %c0_2] : memref<8x256xf32, #tpu.memory_space<vmem>>, vector<8x256xf32>
    %c0_3 = arith.constant 0 : index
    %c128 = arith.constant 128 : index
    %4 = vector.load %arg5[%c0_3, %c128] : memref<8x512xf32, #tpu.memory_space<vmem>>, vector<8x256xf32>
    tpu.vector_store %arg5[%c0_3, %c128], %3 {strides = array<i32>} : memref<8x512xf32, #tpu.memory_space<vmem>>, vector<8x256xf32>,
    %c0_4 = arith.constant 0 : index
    %c0_5 = arith.constant 0 : index
    %5 = vector.load %arg3[%c0_4, %c0_5] : memref<2x256xf32, #tpu.memory_space<vmem>>, vector<1x256xf32>
    %c1 = arith.constant 1 : index
    %c0_6 = arith.constant 0 : index
    %6 = vector.load %arg3[%c1, %c0_6] : memref<2x256xf32, #tpu.memory_space<vmem>>, vector<1x256xf32>
    %c0_7 = arith.constant 0 : index
    %c128_8 = arith.constant 128 : index
    %7 = vector.load %arg5[%c0_7, %c128_8] : memref<8x512xf32, #tpu.memory_space<vmem>>, vector<8x256xf32>
    %c0_9 = arith.constant 0 : index
    %c4 = arith.constant 4 : index
    %8 = vector.load %arg2[%c0_9, %c4] : memref<8x9xf32, #tpu.memory_space<vmem>>, vector<8x1xf32>
    %9 = vector.broadcast %8 : vector<8x1xf32> to vector<8x256xf32>
    %10 = arith.mulf %7, %9 : vector<8x256xf32>
    %c0_10 = arith.constant 0 : index
    %c112 = arith.constant 112 : index
    %11 = vector.load %arg5[%c0_10, %c112] : memref<8x512xf32, #tpu.memory_space<vmem>>, vector<8x256xf32>
    %c0_11 = arith.constant 0 : index
    %c1_12 = arith.constant 1 : index
    %12 = vector.load %arg2[%c0_11, %c1_12] : memref<8x9xf32, #tpu.memory_space<vmem>>, vector<8x1xf32>
    %13 = vector.broadcast %12 : vector<8x1xf32> to vector<8x256xf32>
    %14 = arith.mulf %11, %13 : vector<8x256xf32>
    %15 = arith.addf %10, %14 : vector<8x256xf32>
    %c0_13 = arith.constant 0 : index
    %c144 = arith.constant 144 : index
    %16 = vector.load %arg5[%c0_13, %c144] : memref<8x512xf32, #tpu.memory_space<vmem>>, vector<8x256xf32>
    %c0_14 = arith.constant 0 : index
    %c7 = arith.constant 7 : index
    %17 = vector.load %arg2[%c0_14, %c7] : memref<8x9xf32, #tpu.memory_space<vmem>>, vector<8x1xf32>
    %18 = vector.broadcast %17 : vector<8x1xf32> to vector<8x256xf32>
    %19 = arith.mulf %16, %18 : vector<8x256xf32>
    %20 = arith.addf %15, %19 : vector<8x256xf32>
    %c0_15 = arith.constant 0 : index
    %c127 = arith.constant 127 : index
    %21 = vector.load %arg5[%c0_15, %c127] : memref<8x512xf32, #tpu.memory_space<vmem>>, vector<8x256xf32>
    %c0_16 = arith.constant 0 : index
    %c3 = arith.constant 3 : index
    %22 = vector.load %arg2[%c0_16, %c3] : memref<8x9xf32, #tpu.memory_space<vmem>>, vector<8x1xf32>
    %23 = vector.broadcast %22 : vector<8x1xf32> to vector<8x256xf32>
    %24 = arith.mulf %21, %23 : vector<8x256xf32>
    %c0_17 = arith.constant 0 : index
    %c111_18 = arith.constant 111 : index
    %25 = vector.load %arg5[%c0_17, %c111_18] : memref<8x512xf32, #tpu.memory_space<vmem>>, vector<8x256xf32>
    %c0_19 = arith.constant 0 : index
    %c0_20 = arith.constant 0 : index
    %26 = vector.load %arg2[%c0_19, %c0_20] : memref<8x9xf32, #tpu.memory_space<vmem>>, vector<8x1xf32>
    %27 = vector.broadcast %26 : vector<8x1xf32> to vector<8x256xf32>
    %28 = arith.mulf %25, %27 : vector<8x256xf32>
    %29 = arith.addf %24, %28 : vector<8x256xf32>
    %c0_21 = arith.constant 0 : index
    %c143 = arith.constant 143 : index
    %30 = vector.load %arg5[%c0_21, %c143] : memref<8x512xf32, #tpu.memory_space<vmem>>, vector<8x256xf32>
    %c0_22 = arith.constant 0 : index
    %c6 = arith.constant 6 : index
    %31 = vector.load %arg2[%c0_22, %c6] : memref<8x9xf32, #tpu.memory_space<vmem>>, vector<8x1xf32>
    %32 = vector.broadcast %31 : vector<8x1xf32> to vector<8x256xf32>
    %33 = arith.mulf %30, %32 : vector<8x256xf32>
    %34 = arith.addf %29, %33 : vector<8x256xf32>
    %35 = vector.broadcast %5 : vector<1x256xf32> to vector<8x256xf32>
    %36 = arith.mulf %35, %34 : vector<8x256xf32>
    %37 = arith.addf %20, %36 : vector<8x256xf32>
    %c0_23 = arith.constant 0 : index
    %c129 = arith.constant 129 : index
    %38 = vector.load %arg5[%c0_23, %c129] : memref<8x512xf32, #tpu.memory_space<vmem>>, vector<8x256xf32>
    %c0_24 = arith.constant 0 : index
    %c5 = arith.constant 5 : index
    %39 = vector.load %arg2[%c0_24, %c5] : memref<8x9xf32, #tpu.memory_space<vmem>>, vector<8x1xf32>
    %40 = vector.broadcast %39 : vector<8x1xf32> to vector<8x256xf32>
    %41 = arith.mulf %38, %40 : vector<8x256xf32>
    %c0_25 = arith.constant 0 : index
    %c113 = arith.constant 113 : index
    %42 = vector.load %arg5[%c0_25, %c113] : memref<8x512xf32, #tpu.memory_space<vmem>>, vector<8x256xf32>
    %c0_26 = arith.constant 0 : index
    %c2 = arith.constant 2 : index
    %43 = vector.load %arg2[%c0_26, %c2] : memref<8x9xf32, #tpu.memory_space<vmem>>, vector<8x1xf32>
    %44 = vector.broadcast %43 : vector<8x1xf32> to vector<8x256xf32>
    %45 = arith.mulf %42, %44 : vector<8x256xf32>
    %46 = arith.addf %41, %45 : vector<8x256xf32>
    %c0_27 = arith.constant 0 : index
    %c145 = arith.constant 145 : index
    %47 = vector.load %arg5[%c0_27, %c145] : memref<8x512xf32, #tpu.memory_space<vmem>>, vector<8x256xf32>
    %c0_28 = arith.constant 0 : index
    %c8 = arith.constant 8 : index
    %48 = vector.load %arg2[%c0_28, %c8] : memref<8x9xf32, #tpu.memory_space<vmem>>, vector<8x1xf32>
    %49 = vector.broadcast %48 : vector<8x1xf32> to vector<8x256xf32>
    %50 = arith.mulf %47, %49 : vector<8x256xf32>
    %51 = arith.addf %46, %50 : vector<8x256xf32>
    %52 = vector.broadcast %6 : vector<1x256xf32> to vector<8x256xf32>
    %53 = arith.mulf %52, %51 : vector<8x256xf32>
    %54 = arith.addf %37, %53 : vector<8x256xf32>
    %c0_29 = arith.constant 0 : index
    %c0_30 = arith.constant 0 : index
    %55 = vector.load %arg4[%c0_29, %c0_30] : memref<8x256xf32, #tpu.memory_space<vmem>>, vector<8x256xf32>
    tpu.vector_store %arg4[%c0_29, %c0_30], %54 {strides = array<i32>} : memref<8x256xf32, #tpu.memory_space<vmem>>, vector<8x256xf32>,
    return
  }
  func.func @transform_0(%arg0: i32) -> (i32, i32) {
    %c0_i32 = arith.constant 0 : i32
    %c0_i32_0 = arith.constant 0 : i32
    return %arg0, %c0_i32 : i32, i32
  }
  func.func @transform_1(%arg0: i32) -> (i32, i32) {
    %c0_i32 = arith.constant 0 : i32
    %c0_i32_0 = arith.constant 0 : i32
    return %arg0, %c0_i32 : i32, i32
  }
  func.func @transform_2(%arg0: i32) -> (i32, i32) {
    %c0_i32 = arith.constant 0 : i32
    %c0_i32_0 = arith.constant 0 : i32
    %c0_i32_1 = arith.constant 0 : i32
    return %c0_i32, %c0_i32_0 : i32, i32
  }
  func.func @transform_3(%arg0: i32) -> (i32, i32) {
    %c0_i32 = arith.constant 0 : i32
    %c0_i32_0 = arith.constant 0 : i32
    return %arg0, %c0_i32 : i32, i32
  }
}

</mosaic_0001>

<bundles_post_ra>
// kernel: trainable_smoothing_forward.1
= control target key start
LH: loop header
LB: loop body
LE: loop exit
PB: predicated region body
PF: predicated region fallthrough
CT: control target
= control target key end

     0   :  { %v284_v0 = vmov 0   ;;  %v285_v2 = vmov 2   ;;  %vm14_vm0 = vcmask 1048440   ;;  %vm16_vm1 = vcmask 138240   ;;  %s296_s18 = smov 1   ;;  %s297_s19 = smov 127   ;;  %s407_s1 = inlined_call_operand.vmem [shape: f32[8,9], index: 1, kind: input, shape index: {}]   ;;  %s408_s0 = inlined_call_operand.vmem [shape: f32[8,256], index: 0, kind: input, shape index: {}]   ;;  %s409_s2 = inlined_call_operand.vmem [shape: f32[2,256], index: 2, kind: input, shape index: {}]   ;;  %s410_s3 = inlined_call_operand.vmem [shape: f32[8,256], index: 3, kind: output, shape index: {}]  }
   0x1   :  { %274 = vset.pattern.permute.xlu0 %v284_v0  ;;  %v321_v1 = vld [vmem:[%s407_s1] sm:$0xff]  ;;  %276 = vset.pattern.permute.xlu1 %v285_v2  ;;  %v333_v4 = vld [vmem:[%s408_s0 + $0x8] sm:$0xff]  ;;  %v286_v5 = vmov 0.0   ;;  %v287_v6 = vmov 6   ;;  %v288_v7 = vmov 8   ;;  %v289_v8 = vmov 3  }
   0x2   :  { %v326_v3 = vld [vmem:[%s408_s0] sm:$0xff]  ;;  %93 = vperm.xlu0 %274, %v321_v1   ;;  %177 = vperm.xlu1 %276, %v321_v1   ;;  %15 = vst.msk [vmem:[#allocation2] sm:$0xff] %vm14_vm0, %v286_v5  ;;  %v290_v9 = vmov 1   ;;  %v291_v10 = vmov 5   ;;  %v292_v11 = vmov 7   ;;  %v293_v12 = vmov 4  }
   0x3   :  { %17 = vst.msk [vmem:[#allocation2 + $0x18] sm:$0xff] %vm16_vm1, %v286_v5  ;;  %s294_s0 = smov 16   ;;  %s295_s1 = smov 112   ;;  %vm52_vm2 = vcmask 130048   ;;  %vm78_vm3 = vcmask 916480   ;;  %vm160_vm4 = vcmask 7168  }
   0x4   :  { %vm244_vm5 = vcmask 1039360  }
   0x6   :  { %275 = vset.pattern.permute.xlu0 %v287_v6  ;;  %277 = vset.pattern.permute.xlu1 %v288_v7 }
   0x7   :  { %117 = vperm.xlu0 %275, %v321_v1   ;;  %201 = vperm.xlu1 %277, %v321_v1  }
   0x9   :  { %v35_v13 = vld [vmem:[#allocation2] sm:$0xff] }
   0xa   :  { %v61_v19 = vld [vmem:[#allocation2 + $0x18] sm:$0xff] }
   0xb   :  { %278 = vset.pattern.permute.xlu1 %v289_v8  ;;  %279 = vset.pattern.permute.xlu0 %v290_v9 }
   0xc   :  { %86 = vperm.xlu1 %278, %v321_v1   ;;  %37 = vperm.xlu0 %279, %v321_v1  }
  0x10   :  { %280 = vset.pattern.permute.xlu1 %v291_v10  ;;  %282 = vset.pattern.permute.xlu0 %v293_v12 }
  0x11   :  { %170 = vperm.xlu1 %280, %v321_v1  }
  0x15   :  { %281 = vset.pattern.permute.xlu1 %v292_v11 }
  0x16   :  { %63 = vperm.xlu1 %281, %v321_v1  }
  0x81   :  { %v94_v14 = vpop.permute.xlu0 %93  ;;  %v178_v15 = vpop.permute.xlu1 %177 }
  0x82   :  { %v96_v16 = vmul.f32 %v94_v14, %v35_v13  ;;  %v97_v17 = vmul.f32 %v94_v14, %v326_v3  ;;  %v98_v18 = vmul.f32 %v94_v14, %v333_v4  ;;  %v180_v26 = vmul.f32 %v178_v15, %v35_v13 }
  0x83   :  { %v181_v28 = vmul.f32 %v178_v15, %v326_v3  ;;  %v182_v32 = vmul.f32 %v178_v15, %v333_v4 }
  0x84   :  { %102 = vrot.lane.b32.xlu0 %v96_v16, %s294_s0  ;;  %104 = vrot.lane.b32.xlu1 %v97_v17, %s294_s0 }
  0x86   :  { %v118_v20 = vpop.permute.xlu0 %117  ;;  %v202_v22 = vpop.permute.xlu1 %201 }
  0x87   :  { %v120_v21 = vmul.f32 %v118_v20, %v326_v3  ;;  %v121_v23 = vmul.f32 %v118_v20, %v333_v4  ;;  %v122_v24 = vmul.f32 %v118_v20, %v61_v19  ;;  %v204_v30 = vmul.f32 %v202_v22, %v326_v3 }
  0x88   :  { %106 = vrot.lane.b32.xlu0 %v98_v18, %s294_s0  ;;  %v205_v33 = vmul.f32 %v202_v22, %v333_v4  ;;  %v206_v34 = vmul.f32 %v202_v22, %v61_v19 }
  0x89   :  { %126 = vrot.lane.b32.xlu1 %v120_v21, %s295_s1 }
  0x8b   :  { %v87_v25 = vpop.permute.xlu1 %86  ;;  %v38_v35 = vpop.permute.xlu0 %37 }
  0x8c   :  { %128 = vrot.lane.b32.xlu0 %v121_v23, %s295_s1  ;;  %v89_v27 = vmul.f32 %v87_v25, %v35_v13  ;;  %v40_v36 = vmul.f32 %v38_v35, %v35_v13  ;;  %v42_v37 = vmul.f32 %v38_v35, %v333_v4  ;;  %v41_v38 = vmul.f32 %v38_v35, %v326_v3 }
  0x8d   :  { %130 = vrot.lane.b32.xlu1 %v122_v24, %s295_s1  ;;  %v90_v49 = vmul.f32 %v87_v25, %v326_v3  ;;  %v91_v52 = vmul.f32 %v87_v25, %v333_v4 }
  0x90   :  { %186 = vrot.lane.b32.xlu0 %v180_v26, %s294_s0  ;;  %v171_v29 = vpop.permute.xlu1 %170 }
  0x91   :  { %188 = vrot.lane.b32.xlu1 %v181_v28, %s294_s0  ;;  %v356_v31 = vmul.f32 %v171_v29, %v61_v19  ;;  %v173_v2 = vmul.f32 %v171_v29, %v326_v3  ;;  %v174_v6 = vmul.f32 %v171_v29, %v333_v4 }
  0x94   :  { %190 = vrot.lane.b32.xlu0 %v182_v32, %s294_s0 }
  0x95   :  { %210 = vrot.lane.b32.xlu1 %v204_v30, %s295_s1  ;;  %v64_v39 = vpop.permute.xlu1 %63 }
  0x96   :  { %v67_v40 = vmul.f32 %v64_v39, %v333_v4  ;;  %v66_v41 = vmul.f32 %v64_v39, %v326_v3  ;;  %v68_v42 = vmul.f32 %v64_v39, %v61_v19 }
  0x98   :  { %212 = vrot.lane.b32.xlu0 %v205_v33, %s295_s1 }
  0x99   :  { %214 = vrot.lane.b32.xlu1 %v206_v34, %s295_s1  ;;  %v141_v34 = vlaneseq }
  0x9b   :  { %v142_v35 = vshrl.u32 %v141_v34, 7 }
  0x9c   :  { %30 = vperm.xlu0 %282, %v321_v1  }
  0x9d   :  { %46 = vrot.lane.b32.xlu1 %v40_v36, %s294_s0  ;;  %v143_v36 = vsub.s32 0, %v142_v35 }
  0xa0   :  { %50 = vrot.lane.b32.xlu0 %v42_v37, %s294_s0 }
  0xa1   :  { %48 = vrot.lane.b32.xlu1 %v41_v38, %s294_s0  ;;  %283 = vset.pattern.permute.xlu0 %v288_v7  ;;  %v147_v38 = vsub.s32 1, %v142_v35 }
  0xa4   :  { %74 = vrot.lane.b32.xlu0 %v67_v40, %s295_s1 }
  0xa5   :  { %72 = vrot.lane.b32.xlu1 %v66_v41, %s295_s1 }
  0xa9   :  { %76 = vrot.lane.b32.xlu1 %v68_v42, %s295_s1  ;;  %v259_v42 = vld [vmem:[%s409_s2 + $0x1] ss:$2 sm:$0x3] }
  0xf6   :  { %v103_v43 = vpop.permute.xlu0 %102  ;;  %v105_v44 = vpop.permute.xlu1 %104 }
  0xf7   :  { %v113_v45 = vadd.f32 %v103_v43, %v89_v27  ;;  %v108_v47 = vsel %vm52_vm2, %v103_v43, %v105_v44 }
  0xf8   :  { %v114_v53 = vadd.f32 %v108_v47, %v90_v49 }
  0xfa   :  { %v107_v46 = vpop.permute.xlu0 %106 }
  0xfb   :  { %v127_v48 = vpop.permute.xlu1 %126  ;;  %v109_v50 = vsel %vm52_vm2, %v105_v44, %v107_v46  ;;  %v228_v46 = vrot.slane %v259_v42, %v143_v36 }
  0xfc   :  { %v137_v51 = vadd.f32 %v127_v48, %v113_v45  ;;  %v115_v55 = vadd.f32 %v109_v50, %v91_v52 }
  0xfe   :  { %v129_v54 = vpop.permute.xlu0 %128  ;;  %154 = vrot.lane.b32.xlu0 %v137_v51, %s296_s18  ;;  %v232_v51 = vrot.slane %v259_v42, %v147_v38 }
  0xff   :  { %v132_v56 = vsel %vm78_vm3, %v127_v48, %v129_v54  ;;  %v131_v57 = vpop.permute.xlu1 %130 }
 0x100   :  { %v138_v58 = vadd.f32 %v132_v56, %v114_v53  ;;  %v133_v59 = vsel %vm78_vm3, %v129_v54, %v131_v57 }
 0x101   :  { %v139_v60 = vadd.f32 %v133_v59, %v115_v55 }
 0x102   :  { %v187_v61 = vpop.permute.xlu0 %186  ;;  %156 = vrot.lane.b32.xlu1 %v138_v58, %s296_s18 }
 0x103   :  { %158 = vrot.lane.b32.xlu0 %v139_v60, %s296_s18  ;;  %v189_v62 = vpop.permute.xlu1 %188 }
 0x104   :  { %v192_v0 = vsel %vm52_vm2, %v187_v61, %v189_v62 }
 0x105   :  { %v197_v7 = vadd.f32 %v192_v0, %v173_v2 }
 0x106   :  { %v191_v63 = vpop.permute.xlu0 %190 }
 0x107   :  { %v211_v1 = vpop.permute.xlu1 %210  ;;  %v193_v5 = vsel %vm52_vm2, %v189_v62, %v191_v63  ;;  %v199_v15 = vadd.f32 %v191_v63, %v356_v31 }
 0x108   :  { %v198_v9 = vadd.f32 %v193_v5, %v174_v6 }
 0x10a   :  { %v213_v8 = vpop.permute.xlu0 %212 }
 0x10b   :  { %v216_v10 = vsel %vm78_vm3, %v211_v1, %v213_v8  ;;  %v215_v11 = vpop.permute.xlu1 %214 }
 0x10c   :  { %v221_v12 = vadd.f32 %v216_v10, %v197_v7  ;;  %v217_v13 = vsel %vm78_vm3, %v213_v8, %v215_v11  ;;  %v223_v17 = vadd.f32 %v215_v11, %v199_v15 }
 0x10d   :  { %v222_v14 = vadd.f32 %v217_v13, %v198_v9 }
 0x10e   :  { %238 = vrot.lane.b32.xlu1 %v221_v12, %s297_s19 }
 0x10f   :  { %240 = vrot.lane.b32.xlu0 %v222_v14, %s297_s19  ;;  %v47_v16 = vpop.permute.xlu1 %46 }
 0x112   :  { %242 = vrot.lane.b32.xlu1 %v223_v17, %s297_s19 }
 0x113   :  { %v49_v18 = vpop.permute.xlu1 %48 }
 0x114   :  { %v53_v23 = vsel %vm52_vm2, %v47_v16, %v49_v18 }
 0x117   :  { %v73_v20 = vpop.permute.xlu1 %72 }
 0x11b   :  { %v31_v19 = vpop.permute.xlu0 %30  ;;  %v77_v28 = vpop.permute.xlu1 %76 }
 0x11c   :  { %v33_v21 = vmul.f32 %v31_v19, %v326_v3  ;;  %v34_v22 = vmul.f32 %v31_v19, %v333_v4  ;;  %v22_v4 = vld [vmem:[%s409_s2] ss:$2 sm:$0x3] }
 0x11d   :  { %v144_v39 = vrot.slane %v22_v4, %v143_v36  ;;  %v148_v43 = vrot.slane %v22_v4, %v147_v38 }
 0x11e   :  { %v57_v26 = vadd.f32 %v53_v23, %v33_v21 }
 0x11f   :  { %v51_v24 = vpop.permute.xlu0 %50 }
 0x120   :  { %v54_v25 = vsel %vm52_vm2, %v49_v18, %v51_v24 }
 0x121   :  { %v58_v27 = vadd.f32 %v54_v25, %v34_v22 }
 0x123   :  { %v75_v29 = vpop.permute.xlu0 %74 }
 0x124   :  { %v79_v30 = vsel %vm78_vm3, %v73_v20, %v75_v29  ;;  %v80_v31 = vsel %vm78_vm3, %v75_v29, %v77_v28 }
 0x125   :  { %v83_v32 = vadd.f32 %v79_v30, %v57_v26  ;;  %v84_v33 = vadd.f32 %v80_v31, %v58_v27 }
 0x170   :  { %v155_v3 = vpop.permute.xlu0 %154 }
 0x174   :  { %v157_v37 = vpop.permute.xlu1 %156 }
 0x175   :  { %v161_v40 = vsel %vm160_vm4, %v155_v3, %v157_v37  ;;  %v159_v41 = vpop.permute.xlu0 %158 }
 0x176   :  { %v165_v44 = vmul.f32 %v161_v40, %v144_v39  ;;  %v162_v45 = vsel %vm160_vm4, %v157_v37, %v159_v41 }
 0x177   :  { %v166_v49 = vmul.f32 %v162_v45, %v148_v43 }
 0x178   :  { %v167_v52 = vadd.f32 %v165_v44, %v83_v32 }
 0x179   :  { %v168_v57 = vadd.f32 %v166_v49, %v84_v33 }
 0x180   :  { %v239_v47 = vpop.permute.xlu1 %238 }
 0x181   :  { %v241_v48 = vpop.permute.xlu0 %240 }
 0x182   :  { %v245_v50 = vsel %vm244_vm5, %v239_v47, %v241_v48 }
 0x183   :  { %v249_v53 = vmul.f32 %v245_v50, %v228_v46 }
 0x184   :  { %v243_v54 = vpop.permute.xlu1 %242 }
 0x185   :  { %v251_v55 = vadd.f32 %v249_v53, %v167_v52  ;;  %v246_v56 = vsel %vm244_vm5, %v241_v48, %v243_v54 }
 0x186   :  { %v250_v58 = vmul.f32 %v246_v56, %v232_v51 }
 0x187   :  { %253 = vst [vmem:[%s410_s3] sm:$0xff] %v251_v55 }
 0x188   :  { %v252_v59 = vadd.f32 %v250_v58, %v168_v57 }
 0x18a   :  { %254 = vst [vmem:[%s410_s3 + $0x8] sm:$0xff] %v252_v59 }

</bundles_post_ra>
